<compile_context>
chip_gen: v5e
topology: v5e:2x2
jax: 0.10.0
libtpu: 0.0.40
codegen_flags: <defaults>
</compile_context>

<pallas_src>
import functools
import math

import jax
import jax.numpy as jnp
from jax import lax
from jax.experimental import pallas as pl
from jax.experimental.pallas import tpu as pltpu

_MIB = 1024 * 1024


@functools.lru_cache(maxsize=None)
def _vmem_limit_bytes():
    """Per-generation scoped-VMEM request (conservative fallback: 32 MiB)."""
    try:
        phys = pltpu.get_tpu_info().vmem_capacity_bytes
        return max(32 * _MIB, min(64 * _MIB, phys // 2))
    except Exception:  # query unavailable -> safe everywhere
        return 32 * _MIB


def _round_up(x, m):
    return ((x + m - 1) // m) * m


def _row_tile(m, cap):
    return min(cap, _round_up(m, 8))


def _row_cap():
    return 1024 if _vmem_limit_bytes() >= 64 * _MIB else 512


# --------------------------------------------------------------------------
# kernel bodies
# --------------------------------------------------------------------------

def _matmul_bias_kernel(x_ref, w_ref, b_ref, o_ref):
    # x: (TM, K)  w: (K, E)  b: (1, E)  o: (TM, E); native dtype on MXU, f32 acc.
    acc = jnp.dot(x_ref[...], w_ref[...], preferred_element_type=jnp.float32)
    o_ref[...] = (acc + b_ref[...]).astype(o_ref.dtype)


def _qkv_kernel(x_ref, wq_ref, bq_ref, wkv_ref, bkv_ref, q_ref, kv_ref):
    # Fused Q / KV projection: x tile read from HBM once, two lane-dense outputs.
    x = x_ref[...]
    q = jnp.dot(x, wq_ref[...], preferred_element_type=jnp.float32) + bq_ref[...]
    kv = jnp.dot(x, wkv_ref[...], preferred_element_type=jnp.float32) + bkv_ref[...]
    q_ref[...] = q.astype(q_ref.dtype)
    kv_ref[...] = kv.astype(kv_ref.dtype)


def _sr_ln_kv_kernel(p_ref, wc_ref, bc_ref, g_ref, beta_ref, wkv_ref, bkv_ref,
                     o_ref, *, eps):
    # Fused: sr-conv (as patch matmul) -> LayerNorm (f32) -> KV projection.
    y = jnp.dot(p_ref[...], wc_ref[...], preferred_element_type=jnp.float32)
    y = y + bc_ref[...]
    mu = jnp.mean(y, axis=-1, keepdims=True)
    yc = y - mu
    var = jnp.mean(yc * yc, axis=-1, keepdims=True)
    yn = yc * lax.rsqrt(var + eps)
    yn = yn * g_ref[...] + beta_ref[...]
    acc = jnp.dot(yn.astype(wkv_ref.dtype), wkv_ref[...],
                  preferred_element_type=jnp.float32)
    o_ref[...] = (acc + bkv_ref[...]).astype(o_ref.dtype)


def _flash_mha_kernel(q_ref, kv_ref, o_ref, m_ref, l_ref, acc_ref, *,
                      num_heads, head_dim, scale, nkv, kv_tile, mask_kv):
    # q: (1, TQ, C)  kv: (1, TKV, 2C)  o: (1, TQ, C)
    # Online softmax over the KV grid axis; heads packed along C inside one tile.
    j = pl.program_id(2)
    c = num_heads * head_dim

    @pl.when(j == 0)
    def _():
        m_ref[...] = jnp.full_like(m_ref, -jnp.inf)
        l_ref[...] = jnp.zeros_like(l_ref)
        acc_ref[...] = jnp.zeros_like(acc_ref)

    q_all = q_ref[0] * scale          # (TQ, C) native dtype, scale folded into q
    kv_all = kv_ref[0]                # (TKV, 2C) native dtype

    if mask_kv:  # static: only when the KV axis has a ragged last block
        col_row = j * kv_tile + lax.broadcasted_iota(jnp.int32, (1, kv_tile), 1)
        col_col = j * kv_tile + lax.broadcasted_iota(jnp.int32, (kv_tile, 1), 0)
        valid_row = col_row < nkv      # (1, TKV)
        valid_col = col_col < nkv      # (TKV, 1)

    for h in range(num_heads):        # small static unroll over heads
        hs = slice(h * head_dim, (h + 1) * head_dim)
        vs = slice(c + h * head_dim, c + (h + 1) * head_dim)
        q_h = q_all[:, hs]                                      # (TQ, d)
        k_h = kv_all[:, hs]                                     # (TKV, d)
        v_h = kv_all[:, vs]                                     # (TKV, d)
        s = lax.dot_general(q_h, k_h, (((1,), (1,)), ((), ())),
                            preferred_element_type=jnp.float32)  # (TQ, TKV)
        if mask_kv:
            s = jnp.where(valid_row, s, -1e30)
            v_h = jnp.where(valid_col, v_h, jnp.zeros_like(v_h))

        m_prev = m_ref[:, h:h + 1]
        m_new = jnp.maximum(m_prev, jnp.max(s, axis=-1, keepdims=True))
        alpha = jnp.exp(m_prev - m_new)
        p = jnp.exp(s - m_new)
        l_ref[:, h:h + 1] = alpha * l_ref[:, h:h + 1] + jnp.sum(
            p, axis=-1, keepdims=True)
        acc_ref[:, hs] = alpha * acc_ref[:, hs] + jnp.dot(
            p.astype(v_h.dtype), v_h, preferred_element_type=jnp.float32)
        m_ref[:, h:h + 1] = m_new

    @pl.when(j == pl.num_programs(2) - 1)
    def _():
        for h in range(num_heads):
            hs = slice(h * head_dim, (h + 1) * head_dim)
            inv_l = pl.reciprocal(l_ref[:, h:h + 1], approx=True)
            acc_ref[:, hs] = acc_ref[:, hs] * inv_l
        o_ref[0] = acc_ref[...].astype(o_ref.dtype)   # one lane-dense store


# --------------------------------------------------------------------------
# pallas_call wrappers
# --------------------------------------------------------------------------

def _matmul_bias(x2d, w_mat, b, *, out_dtype=None):
    m, k = x2d.shape
    e = w_mat.shape[1]
    out_dtype = out_dtype or x2d.dtype
    limit = _vmem_limit_bytes()
    tile = _row_tile(m, _row_cap())
    return pl.pallas_call(
        _matmul_bias_kernel,
        out_shape=jax.ShapeDtypeStruct((m, e), out_dtype),
        grid_spec=pltpu.PrefetchScalarGridSpec(
            num_scalar_prefetch=0,
            grid=(pl.cdiv(m, tile),),
            in_specs=[
                pl.BlockSpec((tile, k), lambda i: (i, 0)),
                pl.BlockSpec((k, e), lambda i: (0, 0)),
                pl.BlockSpec((1, e), lambda i: (0, 0)),
            ],
            out_specs=pl.BlockSpec((tile, e), lambda i: (i, 0)),
        ),
        compiler_params=pltpu.CompilerParams(
            dimension_semantics=("parallel",),
            vmem_limit_bytes=limit),
    )(x2d, w_mat, b.reshape(1, e))


def _qkv_proj(x2d, wq_t, bq, wkv_t, bkv, *, out_dtype):
    m, c = x2d.shape
    e = wkv_t.shape[1]
    limit = _vmem_limit_bytes()
    tile = _row_tile(m, _row_cap())
    return pl.pallas_call(
        _qkv_kernel,
        out_shape=(jax.ShapeDtypeStruct((m, c), out_dtype),
                   jax.ShapeDtypeStruct((m, e), out_dtype)),
        grid_spec=pltpu.PrefetchScalarGridSpec(
            num_scalar_prefetch=0,
            grid=(pl.cdiv(m, tile),),
            in_specs=[
                pl.BlockSpec((tile, c), lambda i: (i, 0)),
                pl.BlockSpec((c, c), lambda i: (0, 0)),
                pl.BlockSpec((1, c), lambda i: (0, 0)),
                pl.BlockSpec((c, e), lambda i: (0, 0)),
                pl.BlockSpec((1, e), lambda i: (0, 0)),
            ],
            out_specs=[pl.BlockSpec((tile, c), lambda i: (i, 0)),
                       pl.BlockSpec((tile, e), lambda i: (i, 0))],
        ),
        compiler_params=pltpu.CompilerParams(
            dimension_semantics=("parallel",),
            vmem_limit_bytes=limit),
    )(x2d, wq_t, bq.reshape(1, c), wkv_t, bkv.reshape(1, e))


def _sr_ln_kv(patches, wc_mat, bc, g, beta, wkv_mat, bkv, *, eps, out_dtype):
    m, kp = patches.shape
    c = wc_mat.shape[1]
    e = wkv_mat.shape[1]
    limit = _vmem_limit_bytes()
    tile = _row_tile(m, _row_cap())
    return pl.pallas_call(
        functools.partial(_sr_ln_kv_kernel, eps=eps),
        out_shape=jax.ShapeDtypeStruct((m, e), out_dtype),
        grid_spec=pltpu.PrefetchScalarGridSpec(
            num_scalar_prefetch=0,
            grid=(pl.cdiv(m, tile),),
            in_specs=[
                pl.BlockSpec((tile, kp), lambda i: (i, 0)),
                pl.BlockSpec((kp, c), lambda i: (0, 0)),
                pl.BlockSpec((1, c), lambda i: (0, 0)),
                pl.BlockSpec((1, c), lambda i: (0, 0)),
                pl.BlockSpec((1, c), lambda i: (0, 0)),
                pl.BlockSpec((c, e), lambda i: (0, 0)),
                pl.BlockSpec((1, e), lambda i: (0, 0)),
            ],
            out_specs=pl.BlockSpec((tile, e), lambda i: (i, 0)),
        ),
        compiler_params=pltpu.CompilerParams(
            dimension_semantics=("parallel",),
            vmem_limit_bytes=limit),
    )(patches, wc_mat, bc.reshape(1, c), g.reshape(1, c), beta.reshape(1, c),
      wkv_mat, bkv.reshape(1, e))


def _attention(q3, kv3, *, num_heads, scale):
    # q3: (B, N, C)   kv3: (B, NKV, 2C) with channel layout (2, H, d) packed.
    b, n, c = q3.shape
    nkv = kv3.shape[1]
    d = c // num_heads
    limit = _vmem_limit_bytes()
    q_tile = min(512 if limit >= 64 * _MIB else 256, _round_up(n, 8))
    kv_tile = min(512, _round_up(nkv, 8))
    mask_kv = (nkv % kv_tile) != 0
    grid = (b, pl.cdiv(n, q_tile), pl.cdiv(nkv, kv_tile))
    kernel = functools.partial(
        _flash_mha_kernel, num_heads=num_heads, head_dim=d, scale=scale,
        nkv=nkv, kv_tile=kv_tile, mask_kv=mask_kv)
    return pl.pallas_call(
        kernel,
        out_shape=jax.ShapeDtypeStruct((b, n, c), q3.dtype),
        grid_spec=pltpu.PrefetchScalarGridSpec(
            num_scalar_prefetch=0,
            grid=grid,
            in_specs=[
                pl.BlockSpec((1, q_tile, c), lambda bb, i, j: (bb, i, 0)),
                pl.BlockSpec((1, kv_tile, 2 * c), lambda bb, i, j: (bb, j, 0)),
            ],
            out_specs=pl.BlockSpec((1, q_tile, c), lambda bb, i, j: (bb, i, 0)),
            scratch_shapes=[
                pltpu.VMEM((q_tile, num_heads), jnp.float32),   # running max m
                pltpu.VMEM((q_tile, num_heads), jnp.float32),   # running sum l
                pltpu.VMEM((q_tile, c), jnp.float32),           # acc (all heads)
            ],
        ),
        compiler_params=pltpu.CompilerParams(
            dimension_semantics=("parallel", "parallel", "arbitrary"),
            vmem_limit_bytes=limit),
    )(q3, kv3)


# --------------------------------------------------------------------------
# full SegAttention forward
# --------------------------------------------------------------------------

def seg_attention(x, height, width, params, *, num_heads, sr_ratio, eps=1e-5):
    bs, n, c = x.shape
    d = c // num_heads
    scale = 1.0 / math.sqrt(d)

    wq_t = params["wq"].T      # (c, c)
    wkv_t = params["wkv"].T    # (c, 2c)
    wp_t = params["wp"].T      # (c, c)

    x2d = x.reshape(bs * n, c)

    if sr_ratio == 1:
        # Fused Q/KV projection: x streamed from HBM once, two separate outputs.
        q2d, kv2d = _qkv_proj(x2d, wq_t, params["bq"], wkv_t, params["bkv"],
                              out_dtype=x.dtype)
        n_kv = n
    else:
        q2d = _matmul_bias(x2d, wq_t, params["bq"])
        sr = sr_ratio
        hr, wr = height // sr, width // sr
        n_kv = hr * wr
        # Non-overlapping sr x sr patches in (cin, di, dj) feature order ->
        # matches Conv2d OIHW weight reshaped to (c, c*sr*sr).
        # TODO(synk): fold this transpose into the kv kernel via index_map /
        #             strided in-kernel slices to avoid an extra HBM pass on x.
        xg = x.reshape(bs, hr, sr, wr, sr, c)
        patches = xg.transpose(0, 1, 3, 5, 2, 4).reshape(bs * n_kv, c * sr * sr)
        wc_mat = params["w_sr"].reshape(c, c * sr * sr).T             # (c*sr*sr, c)
        kv2d = _sr_ln_kv(patches, wc_mat, params["b_sr"], params["ln_g"],
                         params["ln_b"], wkv_t, params["bkv"], eps=eps,
                         out_dtype=x.dtype)

    # Heads stay packed along the channel axis: no head transposes; the
    # attention kernel slices heads from the (…, C) / (…, 2C) layouts itself.
    o3 = _attention(q2d.reshape(bs, n, c), kv2d.reshape(bs, n_kv, 2 * c),
                    num_heads=num_heads, scale=scale)

    out2d = _matmul_bias(o3.reshape(bs * n, c), wp_t, params["bp"])
    return out2d.reshape(bs, n, c)


# --------------------------------------------------------------------------
# pure-JAX reference (mirrors the PyTorch module exactly)
# --------------------------------------------------------------------------

def _reference(x, height, width, params, *, num_heads, sr_ratio, eps=1e-5):
    bs, n, c = x.shape
    d = c // num_heads
    scale = 1.0 / math.sqrt(d)
    q = x @ params["wq"].T + params["bq"]
    q = q.reshape(bs, n, num_heads, d).transpose(0, 2, 1, 3)
    if sr_ratio > 1:
        x_ = x.transpose(0, 2, 1).reshape(bs, c, height, width)
        y = lax.conv_general_dilated(
            x_, params["w_sr"], window_strides=(sr_ratio, sr_ratio),
            padding="VALID", dimension_numbers=("NCHW", "OIHW", "NCHW"))
        y = y + params["b_sr"].reshape(1, c, 1, 1)
        y = y.reshape(bs, c, -1).transpose(0, 2, 1)
        mu = jnp.mean(y, axis=-1, keepdims=True)
        var = jnp.mean((y - mu) ** 2, axis=-1, keepdims=True)
        src = (y - mu) * lax.rsqrt(var + eps) * params["ln_g"] + params["ln_b"]
    else:
        src = x
    kv = src @ params["wkv"].T + params["bkv"]
    nkv = src.shape[1]
    kv = kv.reshape(bs, nkv, 2, num_heads, d).transpose(2, 0, 3, 1, 4)
    k, v = kv[0], kv[1]
    attn = jnp.einsum("bhqd,bhkd->bhqk", q, k) * scale
    attn = jax.nn.softmax(attn, axis=-1)
    o = jnp.einsum("bhqk,bhkd->bhqd", attn, v)
    o = o.transpose(0, 2, 1, 3).reshape(bs, n, c)
    return o @ params["wp"].T + params["bp"]


if __name__ == "__main__":
    B, HEIGHT, WIDTH = 2, 8, 8
    DIM, HEADS = 32, 4
    N = HEIGHT * WIDTH

    key = jax.random.PRNGKey(0)
    keys = jax.random.split(key, 10)
    x = jax.random.normal(keys[0], (B, N, DIM), dtype=jnp.float32)
    params = {
        "wq": jax.random.normal(keys[1], (DIM, DIM), jnp.float32) * 0.05,
        "bq": jax.random.normal(keys[2], (DIM,), jnp.float32) * 0.05,
        "wkv": jax.random.normal(keys[3], (2 * DIM, DIM), jnp.float32) * 0.05,
        "bkv": jax.random.normal(keys[4], (2 * DIM,), jnp.float32) * 0.05,
        "wp": jax.random.normal(keys[5], (DIM, DIM), jnp.float32) * 0.05,
        "bp": jax.random.normal(keys[6], (DIM,), jnp.float32) * 0.05,
        "w_sr": jax.random.normal(keys[7], (DIM, DIM, 2, 2), jnp.float32) * 0.05,
        "b_sr": jax.random.normal(keys[8], (DIM,), jnp.float32) * 0.05,
        "ln_g": 1.0 + 0.1 * jax.random.normal(keys[9], (DIM,), jnp.float32),
        "ln_b": jnp.zeros((DIM,), jnp.float32),
    }

    # Exercise both branches of the module: sr_ratio == 1 and sr_ratio > 1.
    for sr in (1, 2):
        out = seg_attention(x, HEIGHT, WIDTH, params, num_heads=HEADS,
                            sr_ratio=sr)
        out = jax.block_until_ready(out)
        ref = _reference(x, HEIGHT, WIDTH, params, num_heads=HEADS,
                         sr_ratio=sr)
        assert out.shape == (B, N, DIM)
        assert jnp.allclose(out, ref, atol=2e-3, rtol=2e-3), f"mismatch sr={sr}"

    print("KERNEL_OK")
</pallas_src>

<mosaic_0001>
module attributes {stable_mosaic.version = 11 : i64} {
  func.func @_qkv_kernel(%arg0: i32, %arg1: memref<128x32xf32, #tpu.memory_space<vmem>>, %arg2: memref<32x32xf32, #tpu.memory_space<vmem>>, %arg3: memref<1x32xf32, #tpu.memory_space<vmem>>, %arg4: memref<32x64xf32, #tpu.memory_space<vmem>>, %arg5: memref<1x64xf32, #tpu.memory_space<vmem>>, %arg6: memref<128x32xf32, #tpu.memory_space<vmem>>, %arg7: memref<128x64xf32, #tpu.memory_space<vmem>>) attributes {dimension_semantics = [#tpu.dimension_semantics<parallel>], iteration_bounds = array<i64: 1>, scalar_prefetch = 0 : i64, scratch_operands = 0 : i64, tpu.core_type = #tpu.core_type<tc>, window_params = [{transform_indices = @transform_0, window_bounds = array<i64: 128, 32>}, {pipeline_mode = #tpu.pipeline_mode<synchronous>, transform_indices = @transform_1, window_bounds = array<i64: 32, 32>}, {pipeline_mode = #tpu.pipeline_mode<synchronous>, transform_indices = @transform_2, window_bounds = array<i64: 1, 32>}, {pipeline_mode = #tpu.pipeline_mode<synchronous>, transform_indices = @transform_3, window_bounds = array<i64: 32, 64>}, {pipeline_mode = #tpu.pipeline_mode<synchronous>, transform_indices = @transform_4, window_bounds = array<i64: 1, 64>}, {transform_indices = @transform_5, window_bounds = array<i64: 128, 32>}, {transform_indices = @transform_6, window_bounds = array<i64: 128, 64>}]} {
    %c0 = arith.constant 0 : index
    %c0_0 = arith.constant 0 : index
    %0 = vector.load %arg1[%c0, %c0_0] : memref<128x32xf32, #tpu.memory_space<vmem>>, vector<128x32xf32>
    %c0_1 = arith.constant 0 : index
    %c0_2 = arith.constant 0 : index
    %1 = vector.load %arg2[%c0_1, %c0_2] : memref<32x32xf32, #tpu.memory_space<vmem>>, vector<32x32xf32>
    %cst = arith.constant dense<0.000000e+00> : vector<128x32xf32>
    %2 = tpu.matmul %0, %1, %cst {dimension_numbers = #tpu.dot_dimension_numbers<[1], [0], [0], [1], [0, 0, 1, 1], [], []>} : vector<128x32xf32>, vector<32x32xf32>, vector<128x32xf32> -> vector<128x32xf32>
    %c0_3 = arith.constant 0 : index
    %c0_4 = arith.constant 0 : index
    %3 = vector.load %arg3[%c0_3, %c0_4] : memref<1x32xf32, #tpu.memory_space<vmem>>, vector<1x32xf32>
    %4 = vector.broadcast %3 : vector<1x32xf32> to vector<128x32xf32>
    %5 = arith.addf %2, %4 : vector<128x32xf32>
    %c0_5 = arith.constant 0 : index
    %c0_6 = arith.constant 0 : index
    %6 = vector.load %arg4[%c0_5, %c0_6] : memref<32x64xf32, #tpu.memory_space<vmem>>, vector<32x64xf32>
    %cst_7 = arith.constant dense<0.000000e+00> : vector<128x64xf32>
    %7 = tpu.matmul %0, %6, %cst_7 {dimension_numbers = #tpu.dot_dimension_numbers<[1], [0], [0], [1], [0, 0, 1, 1], [], []>} : vector<128x32xf32>, vector<32x64xf32>, vector<128x64xf32> -> vector<128x64xf32>
    %c0_8 = arith.constant 0 : index
    %c0_9 = arith.constant 0 : index
    %8 = vector.load %arg5[%c0_8, %c0_9] : memref<1x64xf32, #tpu.memory_space<vmem>>, vector<1x64xf32>
    %9 = vector.broadcast %8 : vector<1x64xf32> to vector<128x64xf32>
    %10 = arith.addf %7, %9 : vector<128x64xf32>
    %c0_10 = arith.constant 0 : index
    %c0_11 = arith.constant 0 : index
    %11 = vector.load %arg6[%c0_10, %c0_11] : memref<128x32xf32, #tpu.memory_space<vmem>>, vector<128x32xf32>
    tpu.vector_store %arg6[%c0_10, %c0_11], %5 {strides = array<i32>} : memref<128x32xf32, #tpu.memory_space<vmem>>, vector<128x32xf32>,
    %c0_12 = arith.constant 0 : index
    %c0_13 = arith.constant 0 : index
    %12 = vector.load %arg7[%c0_12, %c0_13] : memref<128x64xf32, #tpu.memory_space<vmem>>, vector<128x64xf32>
    tpu.vector_store %arg7[%c0_12, %c0_13], %10 {strides = array<i32>} : memref<128x64xf32, #tpu.memory_space<vmem>>, vector<128x64xf32>,
    return
  }
  func.func @transform_0(%arg0: i32) -> (i32, i32) {
    %c0_i32 = arith.constant 0 : i32
    %c0_i32_0 = arith.constant 0 : i32
    return %arg0, %c0_i32 : i32, i32
  }
  func.func @transform_1(%arg0: i32) -> (i32, i32) {
    %c0_i32 = arith.constant 0 : i32
    %c0_i32_0 = arith.constant 0 : i32
    %c0_i32_1 = arith.constant 0 : i32
    return %c0_i32, %c0_i32_0 : i32, i32
  }
  func.func @transform_2(%arg0: i32) -> (i32, i32) {
    %c0_i32 = arith.constant 0 : i32
    %c0_i32_0 = arith.constant 0 : i32
    %c0_i32_1 = arith.constant 0 : i32
    return %c0_i32, %c0_i32_0 : i32, i32
  }
  func.func @transform_3(%arg0: i32) -> (i32, i32) {
    %c0_i32 = arith.constant 0 : i32
    %c0_i32_0 = arith.constant 0 : i32
    %c0_i32_1 = arith.constant 0 : i32
    return %c0_i32, %c0_i32_0 : i32, i32
  }
  func.func @transform_4(%arg0: i32) -> (i32, i32) {
    %c0_i32 = arith.constant 0 : i32
    %c0_i32_0 = arith.constant 0 : i32
    %c0_i32_1 = arith.constant 0 : i32
    return %c0_i32, %c0_i32_0 : i32, i32
  }
  func.func @transform_5(%arg0: i32) -> (i32, i32) {
    %c0_i32 = arith.constant 0 : i32
    %c0_i32_0 = arith.constant 0 : i32
    return %arg0, %c0_i32 : i32, i32
  }
  func.func @transform_6(%arg0: i32) -> (i32, i32) {
    %c0_i32 = arith.constant 0 : i32
    %c0_i32_0 = arith.constant 0 : i32
    return %arg0, %c0_i32 : i32, i32
  }
}

</mosaic_0001>

<bundles_post_ra>
// kernel: tpu_custom_call.1
= control target key start
LH: loop header
LB: loop body
LE: loop exit
PB: predicated region body
PF: predicated region fallthrough
CT: control target
= control target key end

     0   :  { %vm46_vm0 = vcmask 261120   ;;  %vm249_vm1 = vcmask 523264   ;;  %s625_s1 = inlined_call_operand.vmem [shape: f32[32,32], index: 1, kind: input, shape index: {}]   ;;  %s626_s3 = inlined_call_operand.vmem [shape: f32[32,64], index: 3, kind: input, shape index: {}]   ;;  %s627_s0 = inlined_call_operand.vmem [shape: f32[128,32], index: 0, kind: input, shape index: {}]   ;;  %s628_s2 = inlined_call_operand.vmem [shape: f32[1,32], index: 2, kind: input, shape index: {}]   ;;  %s629_s4 = inlined_call_operand.vmem [shape: f32[1,64], index: 4, kind: input, shape index: {}]   ;;  %s630_s5 = inlined_call_operand.vmem [shape: f32[128,32], index: 5, kind: output, shape index: {0}]   ;;  %s631_s6 = inlined_call_operand.vmem [shape: f32[128,64], index: 6, kind: output, shape index: {1}]  }
   0x1   :  { %v41_v0 = vld [vmem:[%s625_s1 + $0x18] sm:$0xff]  ;;  %v40_v2 = vld [vmem:[%s625_s1 + $0x10] sm:$0xff]  ;;  %v39_v4 = vld [vmem:[%s625_s1 + $0x8] sm:$0xff] }
   0x2   :  { %v163_v1 = vld [vmem:[%s626_s3 + $0x18] sm:$0xff]  ;;  %306 = vmatpush.msra.mxu2 %v41_v0  ;;  %v162_v3 = vld [vmem:[%s626_s3 + $0x10] sm:$0xff]  ;;  %v161_v5 = vld [vmem:[%s626_s3 + $0x8] sm:$0xff]  ;;  %107 = vmatpush.msra.mxu0 %v41_v0 }
   0x3   :  { %310 = vmatpush.msra.mxu3 %v163_v1  ;;  %180 = vmatpush.msra.mxu1 %v163_v1  ;;  %v38_v6 = vld [vmem:[%s625_s1] sm:$0xff]  ;;  %v31_v10 = vld [vmem:[%s627_s0 + $0x48] sm:$0xff]  ;;  %v32_v12 = vld [vmem:[%s627_s0 + $0x50] sm:$0xff] }
   0x4   :  { %307 = vmatpush.msra.mxu2 %v40_v2  ;;  %v160_v7 = vld [vmem:[%s626_s3] sm:$0xff]  ;;  %108 = vmatpush.msra.mxu0 %v40_v2  ;;  %v23_v11 = vld [vmem:[%s627_s0 + $0x8] sm:$0xff]  ;;  %v24_v13 = vld [vmem:[%s627_s0 + $0x10] sm:$0xff] }
   0x5   :  { %311 = vmatpush.msra.mxu3 %v162_v3  ;;  %181 = vmatpush.msra.mxu1 %v162_v3  ;;  %v30_v8 = vld [vmem:[%s627_s0 + $0x40] sm:$0xff]  ;;  %v33_v14 = vld [vmem:[%s627_s0 + $0x58] sm:$0xff]  ;;  %v35_v18 = vld [vmem:[%s627_s0 + $0x68] sm:$0xff] }
   0x6   :  { %308 = vmatpush.msra.mxu2 %v39_v4  ;;  %109 = vmatpush.msra.mxu0 %v39_v4  ;;  %v22_v9 = vld [vmem:[%s627_s0] sm:$0xff]  ;;  %v25_v15 = vld [vmem:[%s627_s0 + $0x18] sm:$0xff]  ;;  %v27_v19 = vld [vmem:[%s627_s0 + $0x28] sm:$0xff] }
   0x7   :  { %312 = vmatpush.msra.mxu3 %v161_v5  ;;  %182 = vmatpush.msra.mxu1 %v161_v5  ;;  %v34_v16 = vld [vmem:[%s627_s0 + $0x60] sm:$0xff]  ;;  %v36_v20 = vld [vmem:[%s627_s0 + $0x70] sm:$0xff]  ;;  %v37_v22 = vld [vmem:[%s627_s0 + $0x78] sm:$0xff] }
   0x8   :  { %309 = vmatpush.msra.mxu2 %v38_v6  ;;  %110 = vmatpush.msra.mxu0 %v38_v6  ;;  %v26_v17 = vld [vmem:[%s627_s0 + $0x20] sm:$0xff]  ;;  %v28_v21 = vld [vmem:[%s627_s0 + $0x30] sm:$0xff]  ;;  %v29_v23 = vld [vmem:[%s627_s0 + $0x38] sm:$0xff] }
   0x9   :  { %313 = vmatpush.msra.mxu3 %v160_v7  ;;  %282 = vmatmul.msk.f32.vlgmr.msra.gmra.mxu2 %vm46_vm0, %v30_v8  ;;  %v458_v24 = vld [vmem:[%s628_s2] ss:$0 sm:$0xff] }
   0xa   :  { %298 = vmatmul.msk.f32.vlgmr.msra.gmra.mxu3 %vm46_vm0, %v30_v8  ;;  %183 = vmatpush.msra.mxu1 %v160_v7  ;;  %v463_v25 = vld [vmem:[%s629_s4] ss:$0 sm:$0xff] }
   0xb   :  { %274 = vmatmul.msk.f32.vlgmr.msra.gmra.mxu0 %vm46_vm0, %v22_v9  ;;  %290 = vmatmul.msk.f32.vlgmr.msra.gmra.mxu1 %vm46_vm0, %v22_v9 }
  0x11   :  { %283 = vmatmul.msk.f32.gmra.mxu2 %vm46_vm0, %v31_v10 }
  0x12   :  { %299 = vmatmul.msk.f32.gmra.mxu3 %vm46_vm0, %v31_v10 }
  0x13   :  { %275 = vmatmul.msk.f32.gmra.mxu0 %vm46_vm0, %v23_v11  ;;  %291 = vmatmul.msk.f32.gmra.mxu1 %vm46_vm0, %v23_v11 }
  0x19   :  { %284 = vmatmul.msk.f32.gmra.mxu2 %vm46_vm0, %v32_v12 }
  0x1a   :  { %300 = vmatmul.msk.f32.gmra.mxu3 %vm46_vm0, %v32_v12 }
  0x1b   :  { %276 = vmatmul.msk.f32.gmra.mxu0 %vm46_vm0, %v24_v13  ;;  %292 = vmatmul.msk.f32.gmra.mxu1 %vm46_vm0, %v24_v13 }
  0x21   :  { %285 = vmatmul.msk.f32.gmra.mxu2 %vm46_vm0, %v33_v14 }
  0x22   :  { %301 = vmatmul.msk.f32.gmra.mxu3 %vm46_vm0, %v33_v14 }
  0x23   :  { %277 = vmatmul.msk.f32.gmra.mxu0 %vm46_vm0, %v25_v15  ;;  %293 = vmatmul.msk.f32.gmra.mxu1 %vm46_vm0, %v25_v15 }
  0x29   :  { %286 = vmatmul.msk.f32.gmra.mxu2 %vm46_vm0, %v34_v16 }
  0x2a   :  { %302 = vmatmul.msk.f32.gmra.mxu3 %vm46_vm0, %v34_v16 }
  0x2b   :  { %278 = vmatmul.msk.f32.gmra.mxu0 %vm46_vm0, %v26_v17  ;;  %294 = vmatmul.msk.f32.gmra.mxu1 %vm46_vm0, %v26_v17 }
  0x31   :  { %287 = vmatmul.msk.f32.gmra.mxu2 %vm46_vm0, %v35_v18 }
  0x32   :  { %303 = vmatmul.msk.f32.gmra.mxu3 %vm46_vm0, %v35_v18 }
  0x33   :  { %279 = vmatmul.msk.f32.gmra.mxu0 %vm46_vm0, %v27_v19  ;;  %295 = vmatmul.msk.f32.gmra.mxu1 %vm46_vm0, %v27_v19 }
  0x39   :  { %288 = vmatmul.msk.f32.gmra.mxu2 %vm46_vm0, %v36_v20 }
  0x3a   :  { %304 = vmatmul.msk.f32.gmra.mxu3 %vm46_vm0, %v36_v20 }
  0x3b   :  { %280 = vmatmul.msk.f32.gmra.mxu0 %vm46_vm0, %v28_v21  ;;  %296 = vmatmul.msk.f32.gmra.mxu1 %vm46_vm0, %v28_v21 }
  0x41   :  { %289 = vmatmul.msk.f32.gmra.mxu2 %vm46_vm0, %v37_v22 }
  0x42   :  { %305 = vmatmul.msk.f32.gmra.mxu3 %vm46_vm0, %v37_v22 }
  0x43   :  { %281 = vmatmul.msk.f32.gmra.mxu0 %vm46_vm0, %v29_v23  ;;  %297 = vmatmul.msk.f32.gmra.mxu1 %vm46_vm0, %v29_v23 }
  0x88   :  { %v112_v26 = vpop.f32.mrf.mxu0  ;;  %v185_v27 = vpop.f32.mrf.mxu1 }
  0x89   :  { %v113_v28 = vadd.f32 %v458_v24, %v112_v26  ;;  %v186_v29 = vadd.f32 %v463_v25, %v185_v27 }
  0x8b   :  { %233 = vst.msk [vmem:[%s630_s5] sm:$0xff] %vm46_vm0, %v113_v28 }
  0x8c   :  { %v136_v30 = vpop.f32.mrf.mxu2  ;;  %250 = vst.msk [vmem:[%s631_s6] sm:$0xff] %vm249_vm1, %v186_v29 }
  0x8d   :  { %v209_v31 = vpop.f32.mrf.mxu3  ;;  %v137_v32 = vadd.f32 %v458_v24, %v136_v30 }
  0x8e   :  { %v210_v33 = vadd.f32 %v463_v25, %v209_v31 }
  0x8f   :  { %241 = vst.msk [vmem:[%s630_s5 + $0x40] sm:$0xff] %vm46_vm0, %v137_v32 }
  0x90   :  { %258 = vst.msk [vmem:[%s631_s6 + $0x40] sm:$0xff] %vm249_vm1, %v210_v33  ;;  %v115_v34 = vpop.f32.mrf.mxu0  ;;  %v188_v35 = vpop.f32.mrf.mxu1 }
  0x91   :  { %v116_v36 = vadd.f32 %v458_v24, %v115_v34  ;;  %v189_v37 = vadd.f32 %v463_v25, %v188_v35 }
  0x93   :  { %234 = vst.msk [vmem:[%s630_s5 + $0x8] sm:$0xff] %vm46_vm0, %v116_v36 }
  0x94   :  { %v139_v38 = vpop.f32.mrf.mxu2  ;;  %251 = vst.msk [vmem:[%s631_s6 + $0x8] sm:$0xff] %vm249_vm1, %v189_v37 }
  0x95   :  { %v212_v39 = vpop.f32.mrf.mxu3  ;;  %v140_v40 = vadd.f32 %v458_v24, %v139_v38 }
  0x96   :  { %v213_v41 = vadd.f32 %v463_v25, %v212_v39 }
  0x97   :  { %242 = vst.msk [vmem:[%s630_s5 + $0x48] sm:$0xff] %vm46_vm0, %v140_v40 }
  0x98   :  { %259 = vst.msk [vmem:[%s631_s6 + $0x48] sm:$0xff] %vm249_vm1, %v213_v41  ;;  %v118_v42 = vpop.f32.mrf.mxu0  ;;  %v191_v43 = vpop.f32.mrf.mxu1 }
  0x99   :  { %v119_v44 = vadd.f32 %v458_v24, %v118_v42  ;;  %v192_v45 = vadd.f32 %v463_v25, %v191_v43 }
  0x9b   :  { %235 = vst.msk [vmem:[%s630_s5 + $0x10] sm:$0xff] %vm46_vm0, %v119_v44 }
  0x9c   :  { %v142_v46 = vpop.f32.mrf.mxu2  ;;  %252 = vst.msk [vmem:[%s631_s6 + $0x10] sm:$0xff] %vm249_vm1, %v192_v45 }
  0x9d   :  { %v215_v47 = vpop.f32.mrf.mxu3  ;;  %v143_v48 = vadd.f32 %v458_v24, %v142_v46 }
  0x9e   :  { %v216_v49 = vadd.f32 %v463_v25, %v215_v47 }
  0x9f   :  { %243 = vst.msk [vmem:[%s630_s5 + $0x50] sm:$0xff] %vm46_vm0, %v143_v48 }
  0xa0   :  { %260 = vst.msk [vmem:[%s631_s6 + $0x50] sm:$0xff] %vm249_vm1, %v216_v49  ;;  %v121_v50 = vpop.f32.mrf.mxu0  ;;  %v194_v51 = vpop.f32.mrf.mxu1 }
  0xa1   :  { %v122_v52 = vadd.f32 %v458_v24, %v121_v50  ;;  %v195_v53 = vadd.f32 %v463_v25, %v194_v51 }
  0xa3   :  { %236 = vst.msk [vmem:[%s630_s5 + $0x18] sm:$0xff] %vm46_vm0, %v122_v52 }
  0xa4   :  { %v145_v54 = vpop.f32.mrf.mxu2  ;;  %253 = vst.msk [vmem:[%s631_s6 + $0x18] sm:$0xff] %vm249_vm1, %v195_v53 }
  0xa5   :  { %v218_v55 = vpop.f32.mrf.mxu3  ;;  %v146_v56 = vadd.f32 %v458_v24, %v145_v54 }
  0xa6   :  { %v219_v57 = vadd.f32 %v463_v25, %v218_v55 }
  0xa7   :  { %244 = vst.msk [vmem:[%s630_s5 + $0x58] sm:$0xff] %vm46_vm0, %v146_v56 }
  0xa8   :  { %261 = vst.msk [vmem:[%s631_s6 + $0x58] sm:$0xff] %vm249_vm1, %v219_v57  ;;  %v124_v58 = vpop.f32.mrf.mxu0  ;;  %v197_v59 = vpop.f32.mrf.mxu1 }
  0xa9   :  { %v125_v60 = vadd.f32 %v458_v24, %v124_v58  ;;  %v198_v61 = vadd.f32 %v463_v25, %v197_v59 }
  0xab   :  { %237 = vst.msk [vmem:[%s630_s5 + $0x20] sm:$0xff] %vm46_vm0, %v125_v60 }
  0xac   :  { %v148_v62 = vpop.f32.mrf.mxu2  ;;  %254 = vst.msk [vmem:[%s631_s6 + $0x20] sm:$0xff] %vm249_vm1, %v198_v61 }
  0xad   :  { %v221_v63 = vpop.f32.mrf.mxu3  ;;  %v149_v0 = vadd.f32 %v458_v24, %v148_v62 }
  0xae   :  { %v222_v1 = vadd.f32 %v463_v25, %v221_v63 }
  0xaf   :  { %245 = vst.msk [vmem:[%s630_s5 + $0x60] sm:$0xff] %vm46_vm0, %v149_v0 }
  0xb0   :  { %262 = vst.msk [vmem:[%s631_s6 + $0x60] sm:$0xff] %vm249_vm1, %v222_v1  ;;  %v127_v2 = vpop.f32.mrf.mxu0  ;;  %v200_v3 = vpop.f32.mrf.mxu1 }
  0xb1   :  { %v128_v4 = vadd.f32 %v458_v24, %v127_v2  ;;  %v201_v5 = vadd.f32 %v463_v25, %v200_v3 }
  0xb3   :  { %238 = vst.msk [vmem:[%s630_s5 + $0x28] sm:$0xff] %vm46_vm0, %v128_v4 }
  0xb4   :  { %v151_v6 = vpop.f32.mrf.mxu2  ;;  %255 = vst.msk [vmem:[%s631_s6 + $0x28] sm:$0xff] %vm249_vm1, %v201_v5 }
  0xb5   :  { %v224_v7 = vpop.f32.mrf.mxu3  ;;  %v152_v8 = vadd.f32 %v458_v24, %v151_v6 }
  0xb6   :  { %v225_v9 = vadd.f32 %v463_v25, %v224_v7 }
  0xb7   :  { %246 = vst.msk [vmem:[%s630_s5 + $0x68] sm:$0xff] %vm46_vm0, %v152_v8 }
  0xb8   :  { %263 = vst.msk [vmem:[%s631_s6 + $0x68] sm:$0xff] %vm249_vm1, %v225_v9  ;;  %v130_v10 = vpop.f32.mrf.mxu0  ;;  %v203_v11 = vpop.f32.mrf.mxu1 }
  0xb9   :  { %v131_v12 = vadd.f32 %v458_v24, %v130_v10  ;;  %v204_v13 = vadd.f32 %v463_v25, %v203_v11 }
  0xbb   :  { %239 = vst.msk [vmem:[%s630_s5 + $0x30] sm:$0xff] %vm46_vm0, %v131_v12 }
  0xbc   :  { %v154_v14 = vpop.f32.mrf.mxu2  ;;  %256 = vst.msk [vmem:[%s631_s6 + $0x30] sm:$0xff] %vm249_vm1, %v204_v13 }
  0xbd   :  { %v227_v15 = vpop.f32.mrf.mxu3  ;;  %v155_v16 = vadd.f32 %v458_v24, %v154_v14 }
  0xbe   :  { %v228_v17 = vadd.f32 %v463_v25, %v227_v15 }
  0xbf   :  { %247 = vst.msk [vmem:[%s630_s5 + $0x70] sm:$0xff] %vm46_vm0, %v155_v16 }
  0xc0   :  { %264 = vst.msk [vmem:[%s631_s6 + $0x70] sm:$0xff] %vm249_vm1, %v228_v17  ;;  %v133_v18 = vpop.f32.mrf.mxu0  ;;  %v206_v19 = vpop.f32.mrf.mxu1 }
  0xc1   :  { %v134_v20 = vadd.f32 %v458_v24, %v133_v18  ;;  %v207_v21 = vadd.f32 %v463_v25, %v206_v19 }
  0xc3   :  { %240 = vst.msk [vmem:[%s630_s5 + $0x38] sm:$0xff] %vm46_vm0, %v134_v20 }
  0xc4   :  { %v157_v22 = vpop.f32.mrf.mxu2  ;;  %257 = vst.msk [vmem:[%s631_s6 + $0x38] sm:$0xff] %vm249_vm1, %v207_v21 }
  0xc5   :  { %v230_v23 = vpop.f32.mrf.mxu3  ;;  %v158_v26 = vadd.f32 %v458_v24, %v157_v22 }
  0xc6   :  { %v231_v27 = vadd.f32 %v463_v25, %v230_v23 }
  0xc7   :  { %248 = vst.msk [vmem:[%s630_s5 + $0x78] sm:$0xff] %vm46_vm0, %v158_v26 }
  0xc8   :  { %265 = vst.msk [vmem:[%s631_s6 + $0x78] sm:$0xff] %vm249_vm1, %v231_v27 }

</bundles_post_ra>
